<compile_context>
chip_gen: v6e
topology: v6e:2x2x1
jax: 0.10.0
libtpu: 0.0.40
codegen_flags: <defaults>
</compile_context>

<pallas_src>
import functools

import jax
import jax.numpy as jnp
from jax import lax
from jax.experimental import pallas as pl
from jax.experimental.pallas import tpu as pltpu


def stnkd_kernel(x_ref, w1_ref, shift_ref, w3_ref, bias_iden_ref, o_ref,
                 acc_ref, *, tn, n_true, need_mask):
    """Fused conv1x1(+folded BN scale) + shift + ReLU + running max-pool + fc3."""
    p = pl.program_id(1)

    @pl.when(p == 0)
    def _():
        # ReLU output is >= 0 and there is always >= 1 real point, so 0 is a
        # neutral init for the running max.
        acc_ref[...] = jnp.zeros_like(acc_ref)

    # Batched 1x1 conv on the MXU: (tb,16,k) @ (tb,k,tn) -> (tb,16,tn), f32 acc.
    # Channels (16) on sublanes, points (tn, multiple of 128) on lanes.
    h = jnp.einsum("bck,bkn->bcn", w1_ref[...], x_ref[...],
                   preferred_element_type=jnp.float32)
    # Folded conv-bias + eval-mode BN shift, then ReLU (lane-dense VPU work).
    h = jnp.maximum(h + shift_ref[...], 0.0)
    if need_mask:
        # Zero out padded point columns (0 is neutral for the post-ReLU max).
        col = lax.broadcasted_iota(jnp.int32, h.shape, 2)
        h = jnp.where(col < (n_true - p * tn), h, 0.0)
    # Partial max over this point tile (XLU lane reduction), fold into accum.
    acc_ref[...] = jnp.maximum(acc_ref[...], jnp.max(h, axis=2))

    @pl.when(p == pl.num_programs(1) - 1)
    def _():
        # fc3 + (bias + flattened identity); lane-dense (tb, k*k) store.
        y = jnp.dot(acc_ref[...], w3_ref[...],
                    preferred_element_type=jnp.float32)
        o_ref[...] = (y + bias_iden_ref[...]).astype(o_ref.dtype)


@jax.jit
def stnkd_forward(x, params):
    """x: (B, k, N) float32 (same layout as the PyTorch module's input)."""
    B, k, N = x.shape
    ch = params["conv1_w"].shape[0]            # 16
    kk = k * k
    eps = 1e-5
    LANE = 128

    # --- tiling ---------------------------------------------------------
    # Point tile: multiple of 128 lanes, capped so the x block stays small
    # regardless of N (bounded VMEM; pipelined x DMA).
    n_pad_lane = ((N + LANE - 1) // LANE) * LANE
    tn = min(1024, n_pad_lane)
    n_pad = ((N + tn - 1) // tn) * tn
    need_mask = (n_pad != N)

    # Batch tile: multiple of 8 sublanes for the (tb, k*k) output block.
    b_pad = ((B + 7) // 8) * 8
    tb = 8
    for cand in (32, 16):
        if b_pad % cand == 0:
            tb = cand
            break

    # --- operand prep (no transpose of x; native (B, k, N) layout) -------
    x_bf = x.astype(jnp.bfloat16)
    if b_pad != B or n_pad != N:
        x_bf = jnp.pad(x_bf, ((0, b_pad - B), (0, 0), (0, n_pad - N)))

    # Fold eval-mode BN scale into the conv weight; fold conv bias + BN mean /
    # beta into a single per-channel shift.
    inv_std = params["bn1_gamma"] / jnp.sqrt(params["bn1_var"] + eps)
    w1_scaled = params["conv1_w"] * inv_std[:, None]                  # (16, k)
    w1_b = jnp.broadcast_to(w1_scaled.astype(jnp.bfloat16), (tb, ch, k))
    shift = ((params["conv1_b"] - params["bn1_mean"]) * inv_std
             + params["bn1_beta"]).reshape(1, ch, 1).astype(jnp.float32)

    w3_t = params["fc3_w"].T.astype(jnp.float32)                      # (16, k*k)
    bias_iden = (params["fc3_b"]
                 + jnp.eye(k, dtype=jnp.float32).reshape(-1)).reshape(1, kk)

    # --- VMEM budget (double-buffered blocks + resident weights + slack) --
    x_blk = tb * k * tn * 2            # bf16
    out_blk = tb * kk * 4              # f32
    resident = (tb * ch * k * 2        # w1_b (bf16)
                + ch * 4               # shift
                + ch * kk * 4          # w3
                + kk * 4               # bias + identity
                + tb * ch * 4)         # acc scratch
    vmem_bytes = 2 * x_blk + 2 * out_blk + 2 * resident
    vmem_limit = int(1.25 * vmem_bytes) + (2 << 20)

    out = pl.pallas_call(
        functools.partial(stnkd_kernel, tn=tn, n_true=N, need_mask=need_mask),
        out_shape=jax.ShapeDtypeStruct((b_pad, kk), jnp.float32),
        grid=(b_pad // tb, n_pad // tn),
        in_specs=[
            pl.BlockSpec((tb, k, tn), lambda b, p: (b, 0, p)),   # x tile (pipelined)
            pl.BlockSpec((tb, ch, k), lambda b, p: (0, 0, 0)),   # W1*scale (resident)
            pl.BlockSpec((1, ch, 1), lambda b, p: (0, 0, 0)),    # folded shift
            pl.BlockSpec((ch, kk), lambda b, p: (0, 0)),         # W3^T (resident)
            pl.BlockSpec((1, kk), lambda b, p: (0, 0)),          # fc3 bias + identity
        ],
        out_specs=pl.BlockSpec((tb, kk), lambda b, p: (b, 0)),
        scratch_shapes=[pltpu.VMEM((tb, ch), jnp.float32)],      # running max
        compiler_params=pltpu.CompilerParams(
            dimension_semantics=("parallel", "arbitrary"),
            vmem_limit_bytes=vmem_limit,
        ),
    )(x_bf, w1_b, shift, w3_t, bias_iden)

    return out[:B].reshape(B, k, k)


def stnkd_reference(x, params, eps=1e-5):
    """Pure-JAX reference mirroring the PyTorch forward (eval-mode BN)."""
    B, k, N = x.shape
    h = jnp.einsum("oc,bcn->bon", params["conv1_w"], x)
    h = h + params["conv1_b"][None, :, None]
    h = (h - params["bn1_mean"][None, :, None]) * (
        params["bn1_gamma"][None, :, None]
        / jnp.sqrt(params["bn1_var"] + eps)[None, :, None])
    h = h + params["bn1_beta"][None, :, None]
    h = jnp.maximum(h, 0.0)
    pooled = jnp.max(h, axis=2)                                   # (B, 16)
    y = pooled @ params["fc3_w"].T + params["fc3_b"][None, :]
    y = y + jnp.eye(k, dtype=jnp.float32).reshape(1, -1)
    return y.reshape(B, k, k)


def init_params(key, k=64, ch=16):
    """Deterministic params matching the PyTorch module's layer shapes."""
    kw1, kb1, kg, kbt, km, kv, kw3, kb3 = jax.random.split(key, 8)
    bound1 = 1.0 / float(k) ** 0.5
    bound3 = 1.0 / float(ch) ** 0.5
    return {
        # Conv1d(k, 16, 1): weight (16, k, 1) squeezed to (16, k), bias (16,)
        "conv1_w": jax.random.uniform(kw1, (ch, k), jnp.float32, -bound1, bound1),
        "conv1_b": jax.random.uniform(kb1, (ch,), jnp.float32, -bound1, bound1),
        # BatchNorm1d(16): randomized affine + running stats to exercise folding
        "bn1_gamma": jax.random.uniform(kg, (ch,), jnp.float32, 0.5, 1.5),
        "bn1_beta": 0.1 * jax.random.normal(kbt, (ch,), jnp.float32),
        "bn1_mean": 0.1 * jax.random.normal(km, (ch,), jnp.float32),
        "bn1_var": jax.random.uniform(kv, (ch,), jnp.float32, 0.5, 1.5),
        # Linear(16, k*k): weight (k*k, 16), bias (k*k,)
        "fc3_w": jax.random.uniform(kw3, (k * k, ch), jnp.float32, -bound3, bound3),
        "fc3_b": jax.random.uniform(kb3, (k * k,), jnp.float32, -bound3, bound3),
    }


if __name__ == "__main__":
    key = jax.random.PRNGKey(0)
    k, batch, n_points = 64, 2, 16

    key, kx, kp = jax.random.split(key, 3)
    x = jax.random.normal(kx, (batch, k, n_points), jnp.float32)
    params = init_params(kp, k=k)

    out = stnkd_forward(x, params)
    jax.block_until_ready(out)

    assert out.shape == (batch, k, k), out.shape
    assert out.dtype == jnp.float32, out.dtype

    ref = stnkd_reference(x, params)
    max_err = float(jnp.max(jnp.abs(out - ref)))
    assert max_err < 2e-2, f"max abs error vs reference: {max_err}"

    print("KERNEL_OK")
</pallas_src>

<mosaic_0001>
module attributes {stable_mosaic.version = 11 : i64} {
  func.func @stnkd_kernel(%arg0: i32, %arg1: i32, %arg2: memref<8x64x128xbf16, #tpu.memory_space<vmem>>, %arg3: memref<8x16x64xbf16, #tpu.memory_space<vmem>>, %arg4: memref<1x16x1xf32, #tpu.memory_space<vmem>>, %arg5: memref<16x4096xf32, #tpu.memory_space<vmem>>, %arg6: memref<1x4096xf32, #tpu.memory_space<vmem>>, %arg7: memref<8x4096xf32, #tpu.memory_space<vmem>>, %arg8: memref<8x16xf32, #tpu.memory_space<vmem>>) attributes {dimension_semantics = [#tpu.dimension_semantics<parallel>, #tpu.dimension_semantics<arbitrary>], iteration_bounds = array<i64: 1, 1>, scalar_prefetch = 0 : i64, scratch_operands = 1 : i64, tpu.core_type = #tpu.core_type<tc>, window_params = [{transform_indices = @transform_0, window_bounds = array<i64: 8, 64, 128>}, {pipeline_mode = #tpu.pipeline_mode<synchronous>, transform_indices = @transform_1, window_bounds = array<i64: 8, 16, 64>}, {pipeline_mode = #tpu.pipeline_mode<synchronous>, transform_indices = @transform_2, window_bounds = array<i64: 1, 16, 1>}, {pipeline_mode = #tpu.pipeline_mode<synchronous>, transform_indices = @transform_3, window_bounds = array<i64: 16, 4096>}, {pipeline_mode = #tpu.pipeline_mode<synchronous>, transform_indices = @transform_4, window_bounds = array<i64: 1, 4096>}, {transform_indices = @transform_5, window_bounds = array<i64: 8, 4096>}]} {
    %c0_i32 = arith.constant 0 : i32
    %0 = arith.cmpi eq, %arg1, %c0_i32 : i32
    %1 = arith.extui %0 : i1 to i32
    %c0_i32_0 = arith.constant 0 : i32
    %2 = arith.cmpi ne, %1, %c0_i32_0 : i32
    scf.if %2 {
      %cst_18 = arith.constant 0.000000e+00 : f32
      %25 = vector.broadcast %cst_18 : f32 to vector<8x16xf32>
      %c0_19 = arith.constant 0 : index
      %c0_20 = arith.constant 0 : index
      %26 = vector.load %arg8[%c0_19, %c0_20] : memref<8x16xf32, #tpu.memory_space<vmem>>, vector<8x16xf32>
      tpu.vector_store %arg8[%c0_19, %c0_20], %25 {strides = array<i32>} : memref<8x16xf32, #tpu.memory_space<vmem>>, vector<8x16xf32>,
    } else {
    }
    %c0 = arith.constant 0 : index
    %c0_1 = arith.constant 0 : index
    %c0_2 = arith.constant 0 : index
    %3 = vector.load %arg3[%c0, %c0_1, %c0_2] : memref<8x16x64xbf16, #tpu.memory_space<vmem>>, vector<8x16x64xbf16>
    %c0_3 = arith.constant 0 : index
    %c0_4 = arith.constant 0 : index
    %c0_5 = arith.constant 0 : index
    %4 = vector.load %arg2[%c0_3, %c0_4, %c0_5] : memref<8x64x128xbf16, #tpu.memory_space<vmem>>, vector<8x64x128xbf16>
    "tpu.trace_start"() <{level = 10 : i32, message = "bck,bkn->bcn"}> : () -> ()
    %cst = arith.constant dense<0.000000e+00> : vector<8x16x128xf32>
    %5 = tpu.matmul %3, %4, %cst {dimension_numbers = #tpu.dot_dimension_numbers<[2], [1], [1], [2], [0, 0, 0, 1, 1, 2], [0], [0]>} : vector<8x16x64xbf16>, vector<8x64x128xbf16>, vector<8x16x128xf32> -> vector<8x16x128xf32>
    "tpu.trace_stop"() : () -> ()
    %c0_6 = arith.constant 0 : index
    %c0_7 = arith.constant 0 : index
    %c0_8 = arith.constant 0 : index
    %6 = vector.load %arg4[%c0_6, %c0_7, %c0_8] : memref<1x16x1xf32, #tpu.memory_space<vmem>>, vector<1x16x1xf32>
    %7 = vector.broadcast %6 : vector<1x16x1xf32> to vector<8x16x128xf32>
    %8 = arith.addf %5, %7 : vector<8x16x128xf32>
    %cst_9 = arith.constant 0.000000e+00 : f32
    %9 = vector.broadcast %cst_9 : f32 to vector<8x16x128xf32>
    %10 = arith.maximumf %8, %9 : vector<8x16x128xf32>
    %11 = tpu.iota {dimensions = array<i32: 2>} : vector<8x16x128xi32>
    %c128_i32 = arith.constant 128 : i32
    %12 = arith.muli %arg1, %c128_i32 : i32
    %c16_i32 = arith.constant 16 : i32
    %13 = arith.subi %c16_i32, %12 : i32
    %14 = vector.broadcast %13 : i32 to vector<8x16x128xi32>
    %15 = arith.cmpi slt, %11, %14 : vector<8x16x128xi32>
    %cst_10 = arith.constant 0.000000e+00 : f32
    %16 = vector.broadcast %cst_10 : f32 to vector<8x16x128xf32>
    %17 = arith.select %15, %10, %16 : vector<8x16x128xi1>, vector<8x16x128xf32>
    %c0_11 = arith.constant 0 : index
    %c0_12 = arith.constant 0 : index
    %18 = vector.load %arg8[%c0_11, %c0_12] : memref<8x16xf32, #tpu.memory_space<vmem>>, vector<8x16xf32>
    %cst_13 = arith.constant dense<0xFF800000> : vector<8x16xf32>
    %19 = vector.multi_reduction <maximumf>, %17, %cst_13 [2] : vector<8x16x128xf32> to vector<8x16xf32>
    %20 = arith.maximumf %18, %19 : vector<8x16xf32>
    %c0_14 = arith.constant 0 : index
    %c0_15 = arith.constant 0 : index
    %21 = vector.load %arg8[%c0_14, %c0_15] : memref<8x16xf32, #tpu.memory_space<vmem>>, vector<8x16xf32>
    tpu.vector_store %arg8[%c0_14, %c0_15], %20 {strides = array<i32>} : memref<8x16xf32, #tpu.memory_space<vmem>>, vector<8x16xf32>,
    %c0_i32_16 = arith.constant 0 : i32
    %22 = arith.cmpi eq, %arg1, %c0_i32_16 : i32
    %23 = arith.extui %22 : i1 to i32
    %c0_i32_17 = arith.constant 0 : i32
    %24 = arith.cmpi ne, %23, %c0_i32_17 : i32
    scf.if %24 {
      %c0_18 = arith.constant 0 : index
      %c0_19 = arith.constant 0 : index
      %25 = vector.load %arg8[%c0_18, %c0_19] : memref<8x16xf32, #tpu.memory_space<vmem>>, vector<8x16xf32>
      %c0_20 = arith.constant 0 : index
      %c0_21 = arith.constant 0 : index
      %26 = vector.load %arg5[%c0_20, %c0_21] : memref<16x4096xf32, #tpu.memory_space<vmem>>, vector<16x4096xf32>
      %cst_22 = arith.constant dense<0.000000e+00> : vector<8x4096xf32>
      %27 = tpu.matmul %25, %26, %cst_22 {dimension_numbers = #tpu.dot_dimension_numbers<[1], [0], [0], [1], [0, 0, 1, 1], [], []>} : vector<8x16xf32>, vector<16x4096xf32>, vector<8x4096xf32> -> vector<8x4096xf32>
      %c0_23 = arith.constant 0 : index
      %c0_24 = arith.constant 0 : index
      %28 = vector.load %arg6[%c0_23, %c0_24] : memref<1x4096xf32, #tpu.memory_space<vmem>>, vector<1x4096xf32>
      %29 = vector.broadcast %28 : vector<1x4096xf32> to vector<8x4096xf32>
      %30 = arith.addf %27, %29 : vector<8x4096xf32>
      %c0_25 = arith.constant 0 : index
      %c0_26 = arith.constant 0 : index
      %31 = vector.load %arg7[%c0_25, %c0_26] : memref<8x4096xf32, #tpu.memory_space<vmem>>, vector<8x4096xf32>
      tpu.vector_store %arg7[%c0_25, %c0_26], %30 {strides = array<i32>} : memref<8x4096xf32, #tpu.memory_space<vmem>>, vector<8x4096xf32>,
    } else {
    }
    return
  }
  func.func @transform_0(%arg0: i32, %arg1: i32) -> (i32, i32, i32) {
    %c0_i32 = arith.constant 0 : i32
    %c0_i32_0 = arith.constant 0 : i32
    return %arg0, %c0_i32, %arg1 : i32, i32, i32
  }
  func.func @transform_1(%arg0: i32, %arg1: i32) -> (i32, i32, i32) {
    %c0_i32 = arith.constant 0 : i32
    %c0_i32_0 = arith.constant 0 : i32
    %c0_i32_1 = arith.constant 0 : i32
    %c0_i32_2 = arith.constant 0 : i32
    return %c0_i32, %c0_i32_0, %c0_i32_1 : i32, i32, i32
  }
  func.func @transform_2(%arg0: i32, %arg1: i32) -> (i32, i32, i32) {
    %c0_i32 = arith.constant 0 : i32
    %c0_i32_0 = arith.constant 0 : i32
    %c0_i32_1 = arith.constant 0 : i32
    %c0_i32_2 = arith.constant 0 : i32
    return %c0_i32, %c0_i32_0, %c0_i32_1 : i32, i32, i32
  }
  func.func @transform_3(%arg0: i32, %arg1: i32) -> (i32, i32) {
    %c0_i32 = arith.constant 0 : i32
    %c0_i32_0 = arith.constant 0 : i32
    %c0_i32_1 = arith.constant 0 : i32
    return %c0_i32, %c0_i32_0 : i32, i32
  }
  func.func @transform_4(%arg0: i32, %arg1: i32) -> (i32, i32) {
    %c0_i32 = arith.constant 0 : i32
    %c0_i32_0 = arith.constant 0 : i32
    %c0_i32_1 = arith.constant 0 : i32
    return %c0_i32, %c0_i32_0 : i32, i32
  }
  func.func @transform_5(%arg0: i32, %arg1: i32) -> (i32, i32) {
    %c0_i32 = arith.constant 0 : i32
    %c0_i32_0 = arith.constant 0 : i32
    return %arg0, %c0_i32 : i32, i32
  }
}

</mosaic_0001>

<bundles_post_ra>
// kernel: stnkd_forward.1
= control target key start
LH: loop header
LB: loop body
LE: loop exit
PB: predicated region body
PF: predicated region fallthrough
CT: control target
= control target key end

     0   :  { %v2538_v0 = vmov 0.0   ;;  %vm2539_vm0 = vmmov 0   ;;  %v2540_v4 = vmov 0   ;;  %vm148_vm1 = vcmask 523264   ;;  %s3233_s0 = inlined_call_operand.vmem [shape: bf16[8,64,128], index: 0, kind: input, shape index: {}]   ;;  %s3234_s1 = inlined_call_operand.vmem [shape: bf16[8,16,64], index: 1, kind: input, shape index: {}]   ;;  %s3235_s2 = inlined_call_operand.vmem [shape: f32[1,16,1], index: 2, kind: input, shape index: {}]   ;;  %s3236_s3 = inlined_call_operand.vmem [shape: f32[16,4096], index: 3, kind: input, shape index: {}]   ;;  %s3237_s4 = inlined_call_operand.vmem [shape: f32[1,4096], index: 4, kind: input, shape index: {}]   ;;  %s3238_s5 = inlined_call_operand.vmem [shape: f32[8,4096], index: 5, kind: output, shape index: {}]  }
   0x1   :  { %2398 = vmatprep.subr.bf16.mxu0 %v2538_v0  ;;  %2410 = vmatprep.subr.bf16.mxu1 %v2538_v0  ;;  %v2498_v1 = vld [vmem:[%s3233_s0 + $0x18] sm:$0xff]   ;;  %v2500_v3 = vld [vmem:[%s3233_s0 + $0x10] sm:$0xff]   ;;  %v2502_v6 = vld [vmem:[%s3233_s0 + $0x8] sm:$0xff]   ;;  %v720_v44 = vlaneseq  ;;  %vm25_vm3 = vcmask 130048   ;;  %vm800_vm4 = vcmask 130112   ;;  %vm865_vm5 = vcmask 1041409  }
   0x2   :  { %v2499_v2 = vld [vmem:[%s3233_s0 + $0x38] sm:$0xff]   ;;  %2406 = vmatprep.mubr.msk.bf16.mxu0 %vm2539_vm0, %v2538_v0  ;;  %2418 = vmatprep.mubr.msk.bf16.mxu1 %vm2539_vm0, %v2538_v0  ;;  %v2501_v5 = vld [vmem:[%s3233_s0 + $0x30] sm:$0xff]   ;;  %v2503_v7 = vld [vmem:[%s3233_s0 + $0x28] sm:$0xff]   ;;  %26 = vst.msk [vmem:[#allocation2] sm:$0xff] %vm25_vm3, %v2538_v0  ;;  %vm867_vm6 = vcmask 1042434   ;;  %vm869_vm7 = vcmask 1043459  }
   0x3   :  { %2399 = vmatpush3.bf16.msra.mxu0 %v2498_v1  ;;  %2497 = vset.pattern.permute.xlu0 %v2540_v4  ;;  %v2504_v8 = vld [vmem:[%s3233_s0] sm:$0xff]   ;;  %v2507_v11 = vld [vmem:[%s3234_s1 + $0x8] sm:$0xff]   ;;  %v2508_v12 = vld [vmem:[%s3233_s0 + $0x58] sm:$0xff]   ;;  %v2758_v46 = vand.u32 127, %v720_v44  ;;  %vm871_vm8 = vcmask 1044484   ;;  %vm873_vm9 = vcmask 1045509  }
   0x4   :  { %2411 = vmatpush3.bf16.msra.mxu1 %v2499_v2  ;;  %2400 = vmatprep.subr.bf16.mxu0 %v2538_v0  ;;  %v2505_v9 = vld [vmem:[%s3233_s0 + $0x20] sm:$0xff]   ;;  %v2509_v13 = vld [vmem:[%s3233_s0 + $0x78] sm:$0xff]   ;;  %v2510_v14 = vld [vmem:[%s3233_s0 + $0x50] sm:$0xff]   ;;  %vm875_vm10 = vcmask 1046534   ;;  %vm877_vm11 = vcmask 1047559  }
   0x5   :  { %2412 = vmatprep.subr.bf16.mxu1 %v2538_v0  ;;  %v2506_v10 = vld [vmem:[%s3234_s1] sm:$0xff]   ;;  %v2511_v15 = vld [vmem:[%s3233_s0 + $0x70] sm:$0xff]   ;;  %v2512_v16 = vld [vmem:[%s3233_s0 + $0x48] sm:$0xff]   ;;  %vm725_vm2 = vcmp.lt.s32.totalorder %v2758_v46, 16 }
   0x6   :  { %v2513_v17 = vld [vmem:[%s3233_s0 + $0x68] sm:$0xff]   ;;  %v2514_v18 = vld [vmem:[%s3233_s0 + $0x40] sm:$0xff]   ;;  %v2516_v20 = vld [vmem:[%s3234_s1 + $0x10] sm:$0xff]  }
   0x7   :  { %2401 = vmatpush3.bf16.msra.mxu0 %v2500_v3  ;;  %v2515_v19 = vld [vmem:[%s3233_s0 + $0x60] sm:$0xff]   ;;  %v2517_v21 = vld [vmem:[%s3234_s1 + $0x18] sm:$0xff]   ;;  %v2520_v24 = vld [vmem:[%s3233_s0 + $0x90] sm:$0xff]  }
   0x8   :  { %2413 = vmatpush3.bf16.msra.mxu1 %v2501_v5  ;;  %2402 = vmatprep.subr.bf16.mxu0 %v2538_v0  ;;  %v2518_v22 = vld [vmem:[%s3233_s0 + $0x98] sm:$0xff]   ;;  %v2521_v25 = vld [vmem:[%s3233_s0 + $0xb0] sm:$0xff]   ;;  %v2522_v26 = vld [vmem:[%s3233_s0 + $0x88] sm:$0xff]  }
   0x9   :  { %2414 = vmatprep.subr.bf16.mxu1 %v2538_v0  ;;  %v2519_v23 = vld [vmem:[%s3233_s0 + $0xb8] sm:$0xff]   ;;  %v2523_v27 = vld [vmem:[%s3233_s0 + $0xa8] sm:$0xff]   ;;  %v107_v28 = vld [vmem:[%s3235_s2] sm:$0xff] }
   0xa   :  { %111 = vperm.xlu0 %2497, %v107_v28   ;;  %v2524_v29 = vld [vmem:[%s3233_s0 + $0x80] sm:$0xff]   ;;  %v108_v30 = vld [vmem:[%s3235_s2 + $0x8] sm:$0xff]  ;;  %v2528_v34 = vld [vmem:[%s3233_s0 + $0xd8] sm:$0xff]  }
   0xb   :  { %2403 = vmatpush3.bf16.msra.mxu0 %v2502_v6  ;;  %v2525_v31 = vld [vmem:[%s3233_s0 + $0xa0] sm:$0xff]   ;;  %v2527_v33 = vld [vmem:[%s3234_s1 + $0x28] sm:$0xff]   ;;  %v2529_v35 = vld [vmem:[%s3233_s0 + $0xf8] sm:$0xff]  }
   0xc   :  { %2415 = vmatpush3.bf16.msra.mxu1 %v2503_v7  ;;  %2404 = vmatprep.subr.bf16.mxu0 %v2538_v0  ;;  %v2526_v32 = vld [vmem:[%s3234_s1 + $0x20] sm:$0xff]   ;;  %v2530_v36 = vld [vmem:[%s3233_s0 + $0xd0] sm:$0xff]   ;;  %v2532_v38 = vld [vmem:[%s3233_s0 + $0xc8] sm:$0xff]  }
   0xd   :  { %2416 = vmatprep.subr.bf16.mxu1 %v2538_v0  ;;  %v2531_v37 = vld [vmem:[%s3233_s0 + $0xf0] sm:$0xff]   ;;  %v2533_v39 = vld [vmem:[%s3233_s0 + $0xe8] sm:$0xff]   ;;  %v2534_v40 = vld [vmem:[%s3233_s0 + $0xc0] sm:$0xff]  }
   0xe   :  { %116 = vperm.xlu0 %2497, %v108_v30   ;;  %v2535_v41 = vld [vmem:[%s3233_s0 + $0xe0] sm:$0xff]   ;;  %v2536_v42 = vld [vmem:[%s3234_s1 + $0x30] sm:$0xff]   ;;  %v2537_v43 = vld [vmem:[%s3234_s1 + $0x38] sm:$0xff]  }
   0xf   :  { %2405 = vmatpush3.bf16.msra.mxu0 %v2504_v8 }
  0x10   :  { %2417 = vmatpush3.bf16.msra.mxu1 %v2505_v9  ;;  %2422 = vmatprep.subr.bf16.mxu0 %v2538_v0 }
  0x11   :  { %2434 = vmatprep.subr.bf16.mxu1 %v2538_v0 }
  0x12   :  { %2407 = vmatmul.mubr.msk.bf16.vlgmr.msra.gmra.mxu0 %vm148_vm1, %v2506_v10 }
  0x13   :  { %2419 = vmatmul.mubr.msk.bf16.vlgmr.msra.gmra.mxu1 %vm148_vm1, %v2507_v11  ;;  %2423 = vmatpush3.bf16.msra.mxu0 %v2508_v12 }
  0x14   :  { %2435 = vmatpush3.bf16.msra.mxu1 %v2509_v13  ;;  %2424 = vmatprep.subr.bf16.mxu0 %v2538_v0 }
  0x15   :  { %2436 = vmatprep.subr.bf16.mxu1 %v2538_v0  ;;  %2430 = vmatprep.mubr.msk.bf16.mxu0 %vm2539_vm0, %v2538_v0 }
  0x16   :  { %2442 = vmatprep.mubr.msk.bf16.mxu1 %vm2539_vm0, %v2538_v0 }
  0x17   :  { %2425 = vmatpush3.bf16.msra.mxu0 %v2510_v14 }
  0x18   :  { %2437 = vmatpush3.bf16.msra.mxu1 %v2511_v15  ;;  %2426 = vmatprep.subr.bf16.mxu0 %v2538_v0 }
  0x19   :  { %2438 = vmatprep.subr.bf16.mxu1 %v2538_v0 }
  0x1b   :  { %2427 = vmatpush3.bf16.msra.mxu0 %v2512_v16 }
  0x1c   :  { %2439 = vmatpush3.bf16.msra.mxu1 %v2513_v17  ;;  %2428 = vmatprep.subr.bf16.mxu0 %v2538_v0 }
  0x1d   :  { %2440 = vmatprep.subr.bf16.mxu1 %v2538_v0 }
  0x1f   :  { %2429 = vmatpush3.bf16.msra.mxu0 %v2514_v18 }
  0x20   :  { %2441 = vmatpush3.bf16.msra.mxu1 %v2515_v19  ;;  %2446 = vmatprep.subr.bf16.mxu0 %v2538_v0 }
  0x21   :  { %2458 = vmatprep.subr.bf16.mxu1 %v2538_v0 }
  0x22   :  { %2431 = vmatmul.mubr.msk.bf16.vlgmr.msra.gmra.mxu0 %vm148_vm1, %v2516_v20 }
  0x23   :  { %2443 = vmatmul.mubr.msk.bf16.vlgmr.msra.gmra.mxu1 %vm148_vm1, %v2517_v21  ;;  %2447 = vmatpush3.bf16.msra.mxu0 %v2518_v22 }
  0x24   :  { %2459 = vmatpush3.bf16.msra.mxu1 %v2519_v23  ;;  %2448 = vmatprep.subr.bf16.mxu0 %v2538_v0 }
  0x25   :  { %2460 = vmatprep.subr.bf16.mxu1 %v2538_v0  ;;  %2454 = vmatprep.mubr.msk.bf16.mxu0 %vm2539_vm0, %v2538_v0 }
  0x26   :  { %2466 = vmatprep.mubr.msk.bf16.mxu1 %vm2539_vm0, %v2538_v0 }
  0x27   :  { %2449 = vmatpush3.bf16.msra.mxu0 %v2520_v24 }
  0x28   :  { %2461 = vmatpush3.bf16.msra.mxu1 %v2521_v25  ;;  %2450 = vmatprep.subr.bf16.mxu0 %v2538_v0 }
  0x29   :  { %2462 = vmatprep.subr.bf16.mxu1 %v2538_v0 }
  0x2b   :  { %2451 = vmatpush3.bf16.msra.mxu0 %v2522_v26 }
  0x2c   :  { %2463 = vmatpush3.bf16.msra.mxu1 %v2523_v27  ;;  %2452 = vmatprep.subr.bf16.mxu0 %v2538_v0 }
  0x2d   :  { %2464 = vmatprep.subr.bf16.mxu1 %v2538_v0 }
  0x2f   :  { %2453 = vmatpush3.bf16.msra.mxu0 %v2524_v29 }
  0x30   :  { %2465 = vmatpush3.bf16.msra.mxu1 %v2525_v31  ;;  %2470 = vmatprep.subr.bf16.mxu0 %v2538_v0 }
  0x31   :  { %2482 = vmatprep.subr.bf16.mxu1 %v2538_v0 }
  0x32   :  { %2455 = vmatmul.mubr.msk.bf16.vlgmr.msra.gmra.mxu0 %vm148_vm1, %v2526_v32 }
  0x33   :  { %2467 = vmatmul.mubr.msk.bf16.vlgmr.msra.gmra.mxu1 %vm148_vm1, %v2527_v33  ;;  %2471 = vmatpush3.bf16.msra.mxu0 %v2528_v34 }
  0x34   :  { %2483 = vmatpush3.bf16.msra.mxu1 %v2529_v35  ;;  %2472 = vmatprep.subr.bf16.mxu0 %v2538_v0 }
  0x35   :  { %2484 = vmatprep.subr.bf16.mxu1 %v2538_v0  ;;  %2478 = vmatprep.mubr.msk.bf16.mxu0 %vm2539_vm0, %v2538_v0 }
  0x36   :  { %2490 = vmatprep.mubr.msk.bf16.mxu1 %vm2539_vm0, %v2538_v0 }
  0x37   :  { %2473 = vmatpush3.bf16.msra.mxu0 %v2530_v36 }
  0x38   :  { %2485 = vmatpush3.bf16.msra.mxu1 %v2531_v37  ;;  %2474 = vmatprep.subr.bf16.mxu0 %v2538_v0 }
  0x39   :  { %2486 = vmatprep.subr.bf16.mxu1 %v2538_v0 }
  0x3b   :  { %2475 = vmatpush3.bf16.msra.mxu0 %v2532_v38 }
  0x3c   :  { %2487 = vmatpush3.bf16.msra.mxu1 %v2533_v39  ;;  %2476 = vmatprep.subr.bf16.mxu0 %v2538_v0 }
  0x3d   :  { %2488 = vmatprep.subr.bf16.mxu1 %v2538_v0 }
  0x3f   :  { %2477 = vmatpush3.bf16.msra.mxu0 %v2534_v40 }
  0x40   :  { %2489 = vmatpush3.bf16.msra.mxu1 %v2535_v41 }
  0x42   :  { %2479 = vmatmul.mubr.msk.bf16.vlgmr.msra.gmra.mxu0 %vm148_vm1, %v2536_v42 }
  0x43   :  { %2491 = vmatmul.mubr.msk.bf16.vlgmr.msra.gmra.mxu1 %vm148_vm1, %v2537_v43  ;;  %1186 = vmatprep.mubr.f32.mxu0 %v2538_v0 }
  0x44   :  { %1257 = vmatprep.mubr.f32.mxu1 %v2538_v0 }
  0x85   :  { %v2755_v45 = vpop.permute.xlu0 %111 }
  0x89   :  { %v2762_v52 = vpop.permute.xlu0 %116 }
  0xd2   :  { %v186_v47 = vpop.f32.mrf.mxu0 }
  0xd3   :  { %v187_v48 = vadd.f32 %v186_v47, %v2755_v45  ;;  %v259_v49 = vpop.f32.mrf.mxu1 }
  0xd4   :  { %v260_v50 = vadd.f32 %v259_v49, %v2755_v45  ;;  %v2408_v51 = vpop.f32.mrf.mxu0 }
  0xd5   :  { %v704_v53 = vmax.f32 %v187_v48, 0.0  ;;  %v2420_v54 = vpop.f32.mrf.mxu1 }
  0xd6   :  { %v706_v55 = vmax.f32 %v260_v50, 0.0  ;;  %v189_v56 = vpop.f32.mrf.mxu0 }
  0xd7   :  { %v190_v57 = vadd.f32 %v189_v56, %v2762_v52  ;;  %v262_v58 = vpop.f32.mrf.mxu1  ;;  %v726_v59 = vsel %vm725_vm2, %v704_v53, 0.0 }
  0xd8   :  { %v263_v60 = vadd.f32 %v262_v58, %v2762_v52  ;;  %743 = vmax.xlane.f32.xlu1 %v726_v59  ;;  %v2409_v61 = vpop.f32.mrf.mxu0  ;;  %v728_v62 = vsel %vm725_vm2, %v706_v55, 0.0 }
  0xd9   :  { %v705_v63 = vmax.f32 %v190_v57, 0.0  ;;  %v2421_v1 = vpop.f32.mrf.mxu1  ;;  %747 = vmax.xlane.f32.xlu0 %v728_v62 }
  0xda   :  { %v707_v2 = vmax.f32 %v263_v60, 0.0 }
  0xdb   :  { %v727_v3 = vsel %vm725_vm2, %v705_v63, 0.0 }
  0xdc   :  { %745 = vmax.xlane.f32.xlu1 %v727_v3  ;;  %v729_v4 = vsel %vm725_vm2, %v707_v2, 0.0 }
  0xe0   :  { %749 = vmax.xlane.f32.xlu1 %v729_v4 }
  0xe2   :  { %v332_v5 = vpop.f32.mrf.mxu0 }
  0xe3   :  { %v333_v6 = vadd.f32 %v332_v5, %v2755_v45  ;;  %v405_v7 = vpop.f32.mrf.mxu1  ;;  %v922_v5 = vld [vmem:[%s3236_s3 + $0x118] sm:$0xff] }
  0xe4   :  { %v406_v8 = vadd.f32 %v405_v7, %v2755_v45  ;;  %v2432_v9 = vpop.f32.mrf.mxu0  ;;  %1221 = vmatprep.subr.mxu1 %v922_v5  ;;  %v921_v7 = vld [vmem:[%s3236_s3 + $0x110] sm:$0xff] }
  0xe5   :  { %v708_v10 = vmax.f32 %v333_v6, 0.0  ;;  %v2444_v11 = vpop.f32.mrf.mxu1  ;;  %v919_v6 = vld [vmem:[%s3236_s3 + $0x100] sm:$0xff]  ;;  %1222 = vmatpush1.msra.mxu1 %v921_v7  ;;  %v890_v9 = vld [vmem:[%s3236_s3 + $0x18] sm:$0xff]  ;;  %v925_v5 = vld [vmem:[%s3236_s3 + $0x130] sm:$0xff] }
  0xe6   :  { %v335_v12 = vpop.f32.mrf.mxu0  ;;  %v710_v13 = vmax.f32 %v406_v8, 0.0  ;;  %v888_v8 = vld [vmem:[%s3236_s3 + $0x8] sm:$0xff]  ;;  %1223 = vmatprep.subr.mxu1 %v890_v9  ;;  %v889_v11 = vld [vmem:[%s3236_s3 + $0x10] sm:$0xff]  ;;  %v891_v9 = vld [vmem:[%s3236_s3 + $0x20] sm:$0xff] }
  0xe7   :  { %v336_v14 = vadd.f32 %v335_v12, %v2762_v52  ;;  %v408_v15 = vpop.f32.mrf.mxu1  ;;  %v730_v16 = vsel %vm725_vm2, %v708_v10, 0.0  ;;  %v887_v10 = vld [vmem:[%s3236_s3] sm:$0xff]  ;;  %v924_v12 = vld [vmem:[%s3236_s3 + $0x128] sm:$0xff]  ;;  %1224 = vmatpush1.msra.mxu1 %v889_v11 }
  0xe8   :  { %751 = vmax.xlane.f32.xlu1 %v730_v16  ;;  %v2433_v17 = vpop.f32.mrf.mxu0  ;;  %v409_v20 = vadd.f32 %v408_v15, %v2762_v52  ;;  %v732_v21 = vsel %vm725_vm2, %v710_v13, 0.0  ;;  %v926_v13 = vld [vmem:[%s3236_s3 + $0x138] sm:$0xff]  ;;  %v892_v7 = vld [vmem:[%s3236_s3 + $0x28] sm:$0xff] }
  0xe9   :  { %v2445_v18 = vpop.f32.mrf.mxu1  ;;  %v709_v19 = vmax.f32 %v336_v14, 0.0  ;;  %1363 = vmatprep.subr.mxu1 %v926_v13  ;;  %v928_v11 = vld [vmem:[%s3236_s3 + $0x148] sm:$0xff]  ;;  %v927_v13 = vld [vmem:[%s3236_s3 + $0x140] sm:$0xff] }
  0xea   :  { %v711_v22 = vmax.f32 %v409_v20, 0.0 }
  0xeb   :  { %v731_v23 = vsel %vm725_vm2, %v709_v19, 0.0 }
  0xec   :  { %755 = vmax.xlane.f32.xlu1 %v732_v21  ;;  %v733_v27 = vsel %vm725_vm2, %v711_v22, 0.0 }
  0xf0   :  { %753 = vmax.xlane.f32.xlu1 %v731_v23  ;;  %v795_v23 = vadd.s32 4294967288, %v2758_v46 }
  0xf2   :  { %v478_v24 = vpop.f32.mrf.mxu0 }
  0xf3   :  { %v479_v25 = vadd.f32 %v478_v24, %v2755_v45  ;;  %v551_v26 = vpop.f32.mrf.mxu1  ;;  %v2845_v24 = vshrl.u32 %v720_v44, 7 }
  0xf4   :  { %v552_v28 = vadd.f32 %v551_v26, %v2755_v45  ;;  %757 = vmax.xlane.f32.xlu1 %v733_v27  ;;  %v2456_v29 = vpop.f32.mrf.mxu0 }
  0xf5   :  { %v712_v30 = vmax.f32 %v479_v25, 0.0  ;;  %v2468_v31 = vpop.f32.mrf.mxu1  ;;  %v798_v25 = vsub.s32 %v795_v23, %v2845_v24  ;;  %v900_v23 = vld [vmem:[%s3236_s3 + $0x68] sm:$0xff] }
  0xf6   :  { %v481_v32 = vpop.f32.mrf.mxu0  ;;  %v714_v33 = vmax.f32 %v552_v28, 0.0  ;;  %v793_v28 = vsub.s32 %v2758_v46, %v2845_v24 }
  0xf7   :  { %v482_v34 = vadd.f32 %v481_v32, %v2762_v52  ;;  %v554_v35 = vpop.f32.mrf.mxu1  ;;  %v734_v36 = vsel %vm725_vm2, %v712_v30, 0.0 }
  0xf8   :  { %v555_v37 = vadd.f32 %v554_v35, %v2762_v52  ;;  %759 = vmax.xlane.f32.xlu1 %v734_v36  ;;  %v2457_v38 = vpop.f32.mrf.mxu0  ;;  %v736_v42 = vsel %vm725_vm2, %v714_v33, 0.0 }
  0xf9   :  { %v2469_v39 = vpop.f32.mrf.mxu1  ;;  %v713_v41 = vmax.f32 %v482_v34, 0.0 }
  0xfa   :  { %v715_v40 = vmax.f32 %v555_v37, 0.0 }
  0xfb   :  { %v735_v47 = vsel %vm725_vm2, %v713_v41, 0.0 }
  0xfc   :  { %v737_v43 = vsel %vm725_vm2, %v715_v40, 0.0  ;;  %763 = vmax.xlane.f32.xlu1 %v736_v42 }
  0xfd   :  { %765 = vmax.xlane.f32.xlu0 %v737_v43 }
 0x100   :  { %761 = vmax.xlane.f32.xlu1 %v735_v47 }
 0x102   :  { %v624_v48 = vpop.f32.mrf.mxu0 }
 0x103   :  { %v625_v49 = vadd.f32 %v624_v48, %v2755_v45  ;;  %v697_v50 = vpop.f32.mrf.mxu1 }
 0x104   :  { %v698_v51 = vadd.f32 %v697_v50, %v2755_v45  ;;  %v2480_v53 = vpop.f32.mrf.mxu0 }
 0x105   :  { %v716_v54 = vmax.f32 %v625_v49, 0.0  ;;  %v2492_v55 = vpop.f32.mrf.mxu1 }
 0x106   :  { %v627_v56 = vpop.f32.mrf.mxu0  ;;  %v718_v57 = vmax.f32 %v698_v51, 0.0 }
 0x107   :  { %v628_v58 = vadd.f32 %v627_v56, %v2762_v52  ;;  %v700_v59 = vpop.f32.mrf.mxu1  ;;  %v738_v60 = vsel %vm725_vm2, %v716_v54, 0.0 }
 0x108   :  { %v701_v61 = vadd.f32 %v700_v59, %v2762_v52  ;;  %767 = vmax.xlane.f32.xlu1 %v738_v60  ;;  %v2481_v62 = vpop.f32.mrf.mxu0  ;;  %v740_v45 = vsel %vm725_vm2, %v718_v57, 0.0  ;;  %v920_v52 = vld [vmem:[%s3236_s3 + $0x108] sm:$0xff] }
 0x109   :  { %v717_v63 = vmax.f32 %v628_v58, 0.0  ;;  %v2493_v1 = vpop.f32.mrf.mxu1  ;;  %1150 = vmatprep.subr.mxu0 %v920_v52  ;;  %v923_v52 = vld [vmem:[%s3236_s3 + $0x120] sm:$0xff] }
 0x10a   :  { %v719_v2 = vmax.f32 %v701_v61, 0.0  ;;  %1151 = vmatpush1.msra.mxu0 %v919_v6  ;;  %v742_v1 = vld [vmem:[#allocation2] sm:$0xff] }
 0x10b   :  { %v739_v3 = vsel %vm725_vm2, %v717_v63, 0.0  ;;  %1152 = vmatprep.subr.mxu0 %v888_v8  ;;  %v894_v8 = vld [vmem:[%s3236_s3 + $0x38] sm:$0xff] }
 0x10c   :  { %771 = vmax.xlane.f32.xlu1 %v740_v45  ;;  %769 = vmax.xlane.f32.xlu0 %v739_v3  ;;  %v741_v4 = vsel %vm725_vm2, %v719_v2, 0.0 }
 0x10d   :  { %1153 = vmatpush1.msra.mxu0 %v887_v10  ;;  %v893_v10 = vld [vmem:[%s3236_s3 + $0x30] sm:$0xff] }
 0x10e   :  { %1292 = vmatprep.subr.mxu0 %v924_v12  ;;  %v930_v12 = vld [vmem:[%s3236_s3 + $0x158] sm:$0xff] }
 0x110   :  { %773 = vmax.xlane.f32.xlu0 %v741_v4 }
 0x161   :  { %v744_v14 = vpop.xlane.xlu1 %743 }
 0x162   :  { %v748_v26 = vpop.xlane.xlu0 %747  ;;  %v794_v38 = vrot.slane %v744_v14, %v793_v28  ;;  %v929_v14 = vld [vmem:[%s3236_s3 + $0x150] sm:$0xff] }
 0x163   :  { %v805_v32 = vrot.slane %v748_v26, %v793_v28  ;;  %v899_v26 = vld [vmem:[%s3236_s3 + $0x60] sm:$0xff] }
 0x165   :  { %v746_v15 = vpop.xlane.xlu1 %745 }
 0x166   :  { %v799_v31 = vrot.slane %v746_v15, %v798_v25  ;;  %v896_v15 = vld [vmem:[%s3236_s3 + $0x48] sm:$0xff] }
 0x168   :  { %v801_v46 = vsel %vm800_vm4, %v799_v31, %v794_v38  ;;  %v937_v31 = vld [vmem:[%s3236_s3 + $0x190] sm:$0xff]  ;;  %v939_v38 = vld [vmem:[%s3236_s3 + $0x1a0] sm:$0xff] }
 0x169   :  { %v750_v16 = vpop.xlane.xlu1 %749 }
 0x16a   :  { %v809_v29 = vrot.slane %v750_v16, %v798_v25  ;;  %v898_v16 = vld [vmem:[%s3236_s3 + $0x58] sm:$0xff] }
 0x16c   :  { %v810_v44 = vsel %vm800_vm4, %v809_v29, %v805_v32  ;;  %v938_v29 = vld [vmem:[%s3236_s3 + $0x198] sm:$0xff]  ;;  %v904_v32 = vld [vmem:[%s3236_s3 + $0x88] sm:$0xff] }
 0x16d   :  { %v866_v43 = vsel %vm865_vm5, %v810_v44, %v801_v46  ;;  %v941_v44 = vld [vmem:[%s3236_s3 + $0x1b0] sm:$0xff] }
 0x16e   :  { %v909_v46 = vld [vmem:[%s3236_s3 + $0xb0] sm:$0xff] }
 0x171   :  { %v752_v17 = vpop.xlane.xlu1 %751 }
 0x172   :  { %v814_v34 = vrot.slane %v752_v17, %v793_v28  ;;  %v895_v17 = vld [vmem:[%s3236_s3 + $0x40] sm:$0xff] }
 0x175   :  { %v756_v18 = vpop.xlane.xlu1 %755 }
 0x176   :  { %v823_v39 = vrot.slane %v756_v18, %v793_v28  ;;  %v897_v18 = vld [vmem:[%s3236_s3 + $0x50] sm:$0xff] }
 0x179   :  { %v754_v19 = vpop.xlane.xlu1 %753 }
 0x17a   :  { %v818_v30 = vrot.slane %v754_v19, %v798_v25  ;;  %v932_v19 = vld [vmem:[%s3236_s3 + $0x168] sm:$0xff] }
 0x17c   :  { %v819_v40 = vsel %vm800_vm4, %v818_v30, %v814_v34  ;;  %v935_v30 = vld [vmem:[%s3236_s3 + $0x180] sm:$0xff] }
 0x17d   :  { %v758_v20 = vpop.xlane.xlu1 %757  ;;  %v868_v49 = vsel %vm867_vm6, %v819_v40, %v866_v43  ;;  %v903_v34 = vld [vmem:[%s3236_s3 + $0x80] sm:$0xff]  ;;  %v910_v40 = vld [vmem:[%s3236_s3 + $0xb8] sm:$0xff] }
 0x17e   :  { %v827_v33 = vrot.slane %v758_v20, %v798_v25  ;;  %v934_v20 = vld [vmem:[%s3236_s3 + $0x178] sm:$0xff] }
 0x17f   :  { %v946_v43 = vld [vmem:[%s3236_s3 + $0x1d8] sm:$0xff] }
 0x180   :  { %v828_v42 = vsel %vm800_vm4, %v827_v33, %v823_v39  ;;  %v906_v33 = vld [vmem:[%s3236_s3 + $0x98] sm:$0xff]  ;;  %v908_v39 = vld [vmem:[%s3236_s3 + $0xa8] sm:$0xff] }
 0x181   :  { %v760_v21 = vpop.xlane.xlu1 %759  ;;  %v870_v54 = vsel %vm869_vm7, %v828_v42, %v868_v49  ;;  %v944_v42 = vld [vmem:[%s3236_s3 + $0x1c8] sm:$0xff] }
 0x182   :  { %v832_v41 = vrot.slane %v760_v21, %v793_v28  ;;  %v931_v21 = vld [vmem:[%s3236_s3 + $0x160] sm:$0xff]  ;;  %v912_v49 = vld [vmem:[%s3236_s3 + $0xc8] sm:$0xff] }
 0x185   :  { %v764_v22 = vpop.xlane.xlu1 %763 }
 0x186   :  { %v766_v35 = vpop.xlane.xlu0 %765  ;;  %v841_v51 = vrot.slane %v764_v22, %v793_v28  ;;  %v933_v22 = vld [vmem:[%s3236_s3 + $0x170] sm:$0xff] }
 0x187   :  { %v845_v50 = vrot.slane %v766_v35, %v798_v25  ;;  %v905_v35 = vld [vmem:[%s3236_s3 + $0x90] sm:$0xff] }
 0x189   :  { %v762_v27 = vpop.xlane.xlu1 %761  ;;  %v846_v60 = vsel %vm800_vm4, %v845_v50, %v841_v51  ;;  %v914_v50 = vld [vmem:[%s3236_s3 + $0xd8] sm:$0xff]  ;;  %v911_v51 = vld [vmem:[%s3236_s3 + $0xc0] sm:$0xff] }
 0x18a   :  { %v836_v36 = vrot.slane %v762_v27, %v798_v25  ;;  %v901_v27 = vld [vmem:[%s3236_s3 + $0x70] sm:$0xff] }
 0x18c   :  { %v837_v47 = vsel %vm800_vm4, %v836_v36, %v832_v41  ;;  %v940_v36 = vld [vmem:[%s3236_s3 + $0x1a8] sm:$0xff]  ;;  %v907_v41 = vld [vmem:[%s3236_s3 + $0xa0] sm:$0xff] }
 0x18d   :  { %v872_v57 = vsel %vm871_vm8, %v837_v47, %v870_v54  ;;  %v943_v47 = vld [vmem:[%s3236_s3 + $0x1c0] sm:$0xff]  ;;  %v948_v54 = vld [vmem:[%s3236_s3 + $0x1e8] sm:$0xff] }
 0x18e   :  { %v874_v63 = vsel %vm873_vm9, %v846_v60, %v872_v57  ;;  %v949_v57 = vld [vmem:[%s3236_s3 + $0x1f0] sm:$0xff]  ;;  %v915_v60 = vld [vmem:[%s3236_s3 + $0xe0] sm:$0xff] }
 0x191   :  { %v768_v37 = vpop.xlane.xlu1 %767 }
 0x192   :  { %v850_v55 = vrot.slane %v768_v37, %v793_v28  ;;  %v942_v37 = vld [vmem:[%s3236_s3 + $0x1b8] sm:$0xff] }
 0x195   :  { %v770_v48 = vpop.xlane.xlu0 %769  ;;  %v772_v56 = vpop.xlane.xlu1 %771 }
 0x196   :  { %v854_v53 = vrot.slane %v770_v48, %v798_v25  ;;  %v859_v61 = vrot.slane %v772_v56, %v793_v28  ;;  %v936_v28 = vld [vmem:[%s3236_s3 + $0x188] sm:$0xff]  ;;  %v945_v48 = vld [vmem:[%s3236_s3 + $0x1d0] sm:$0xff]  ;;  %v947_v56 = vld [vmem:[%s3236_s3 + $0x1e0] sm:$0xff] }
 0x198   :  { %v855_v58 = vsel %vm800_vm4, %v854_v53, %v850_v55  ;;  %v913_v53 = vld [vmem:[%s3236_s3 + $0xd0] sm:$0xff]  ;;  %v950_v55 = vld [vmem:[%s3236_s3 + $0x1f8] sm:$0xff] }
 0x199   :  { %v774_v59 = vpop.xlane.xlu0 %773  ;;  %v876_v2 = vsel %vm875_vm10, %v855_v58, %v874_v63  ;;  %v916_v58 = vld [vmem:[%s3236_s3 + $0xe8] sm:$0xff]  ;;  %v3073_v63 = vsub.s32 2, %v2845_v24 }
 0x19a   :  { %v863_v62 = vrot.slane %v774_v59, %v798_v25  ;;  %v902_v25 = vld [vmem:[%s3236_s3 + $0x78] sm:$0xff] }
 0x19b   :  { %v918_v59 = vld [vmem:[%s3236_s3 + $0xf8] sm:$0xff] }
 0x19c   :  { %v864_v45 = vsel %vm800_vm4, %v863_v62, %v859_v61  ;;  %v917_v61 = vld [vmem:[%s3236_s3 + $0xf0] sm:$0xff]  ;;  %v3070_v62 = vsub.s32 0, %v2845_v24 }
 0x19d   :  { %v878_v3 = vsel %vm877_vm11, %v864_v45, %v876_v2  ;;  %v3079_v2 = vsub.s32 1, %v2845_v24 }
 0x19e   :  { %v880_v4 = vmax.f32 %v742_v1, %v878_v3  ;;  %v951_v1 = vld [vmem:[%s3237_s4] sm:$0xff] }
 0x19f   :  { %v962_v45 = vrot.slane %v951_v1, %v3070_v62  ;;  %v970_v3 = vrot.slane %v951_v1, %v3073_v63 }
 0x1a0   :  { %882 = vst.msk [vmem:[#allocation2] sm:$0xff] %vm25_vm3, %v880_v4  ;;  %v966_v4 = vrot.slane %v951_v1, %v3079_v2 }
 0x1a7   :  { %v2865_v6 = vld [vmem:[#allocation2] sm:$0xff] }
 0x1a8   :  { %2342 = vmatmul.mubr.msk.f32.vlgmr.msra.gmra.mxu0 %vm25_vm3, %v2865_v6  ;;  %2343 = vmatmul.mubr.msk.f32.vlgmr.msra.gmra.mxu1 %vm25_vm3, %v2865_v6 }
 0x1a9   :  { %1293 = vmatpush1.msra.mxu0 %v923_v52  ;;  %1364 = vmatpush1.msra.mxu1 %v925_v5  ;;  %v3089_v5 = vsub.s32 4, %v2845_v24 }
 0x1aa   :  { %1294 = vmatprep.subr.mxu0 %v892_v7  ;;  %1365 = vmatprep.subr.mxu1 %v894_v8 }
 0x1ab   :  { %1295 = vmatpush1.msra.mxu0 %v891_v9  ;;  %1366 = vmatpush1.msra.mxu1 %v893_v10 }
 0x1ac   :  { %1328 = vmatprep.mubr.f32.mxu0 %v2538_v0  ;;  %1399 = vmatprep.mubr.f32.mxu1 %v2538_v0 }
 0x1ad   :  { %1434 = vmatprep.subr.mxu0 %v928_v11  ;;  %1505 = vmatprep.subr.mxu1 %v930_v12  ;;  %v3095_v11 = vsub.s32 5, %v2845_v24  ;;  %v3098_v12 = vsub.s32 7, %v2845_v24 }
 0x1ae   :  { %2344 = vmatmul.mubr.msk.f32.vlgmr.msra.gmra.mxu0 %vm25_vm3, %v2865_v6  ;;  %2345 = vmatmul.mubr.msk.f32.vlgmr.msra.gmra.mxu1 %vm25_vm3, %v2865_v6 }
 0x1af   :  { %1435 = vmatpush1.msra.mxu0 %v927_v13  ;;  %1506 = vmatpush1.msra.mxu1 %v929_v14 }
 0x1b0   :  { %1436 = vmatprep.subr.mxu0 %v896_v15  ;;  %1507 = vmatprep.subr.mxu1 %v898_v16 }
 0x1b1   :  { %1437 = vmatpush1.msra.mxu0 %v895_v17  ;;  %1508 = vmatpush1.msra.mxu1 %v897_v18  ;;  %v978_v17 = vrot.slane %v951_v1, %v3089_v5 }
 0x1b2   :  { %1470 = vmatprep.mubr.f32.mxu0 %v2538_v0  ;;  %1541 = vmatprep.mubr.f32.mxu1 %v2538_v0 }
 0x1b3   :  { %1576 = vmatprep.subr.mxu0 %v932_v19  ;;  %1647 = vmatprep.subr.mxu1 %v934_v20  ;;  %v990_v19 = vrot.slane %v951_v1, %v3098_v12 }
 0x1b4   :  { %2346 = vmatmul.mubr.msk.f32.vlgmr.msra.gmra.mxu0 %vm25_vm3, %v2865_v6  ;;  %2347 = vmatmul.mubr.msk.f32.vlgmr.msra.gmra.mxu1 %vm25_vm3, %v2865_v6 }
 0x1b5   :  { %1577 = vmatpush1.msra.mxu0 %v931_v21  ;;  %1648 = vmatpush1.msra.mxu1 %v933_v22  ;;  %v952_v22 = vld [vmem:[%s3237_s4 + $0x8] sm:$0xff] }
 0x1b6   :  { %1578 = vmatprep.subr.mxu0 %v900_v23  ;;  %1649 = vmatprep.subr.mxu1 %v902_v25 }
 0x1b7   :  { %1579 = vmatpush1.msra.mxu0 %v899_v26  ;;  %1650 = vmatpush1.msra.mxu1 %v901_v27 }
 0x1b8   :  { %1612 = vmatprep.mubr.f32.mxu0 %v2538_v0  ;;  %1683 = vmatprep.mubr.f32.mxu1 %v2538_v0 }
 0x1b9   :  { %1718 = vmatprep.subr.mxu0 %v936_v28  ;;  %1789 = vmatprep.subr.mxu1 %v938_v29 }
 0x1ba   :  { %2348 = vmatmul.mubr.msk.f32.vlgmr.msra.gmra.mxu0 %vm25_vm3, %v2865_v6  ;;  %2349 = vmatmul.mubr.msk.f32.vlgmr.msra.gmra.mxu1 %vm25_vm3, %v2865_v6 }
 0x1bb   :  { %1719 = vmatpush1.msra.mxu0 %v935_v30  ;;  %1790 = vmatpush1.msra.mxu1 %v937_v31  ;;  %v994_v30 = vrot.slane %v952_v22, %v3070_v62  ;;  %v1002_v31 = vrot.slane %v952_v22, %v3073_v63 }
 0x1bc   :  { %1720 = vmatprep.subr.mxu0 %v904_v32  ;;  %1791 = vmatprep.subr.mxu1 %v906_v33  ;;  %v998_v32 = vrot.slane %v952_v22, %v3079_v2 }
 0x1bd   :  { %1721 = vmatpush1.msra.mxu0 %v903_v34  ;;  %1792 = vmatpush1.msra.mxu1 %v905_v35 }
 0x1be   :  { %1754 = vmatprep.mubr.f32.mxu0 %v2538_v0  ;;  %1825 = vmatprep.mubr.f32.mxu1 %v2538_v0 }
 0x1bf   :  { %1860 = vmatprep.subr.mxu0 %v940_v36  ;;  %1931 = vmatprep.subr.mxu1 %v942_v37 }
 0x1c0   :  { %2350 = vmatmul.mubr.msk.f32.vlgmr.msra.gmra.mxu0 %vm25_vm3, %v2865_v6  ;;  %2351 = vmatmul.mubr.msk.f32.vlgmr.msra.gmra.mxu1 %vm25_vm3, %v2865_v6 }
 0x1c1   :  { %1861 = vmatpush1.msra.mxu0 %v939_v38  ;;  %1932 = vmatpush1.msra.mxu1 %v941_v44 }
 0x1c2   :  { %1862 = vmatprep.subr.mxu0 %v908_v39  ;;  %1933 = vmatprep.subr.mxu1 %v910_v40 }
 0x1c3   :  { %1863 = vmatpush1.msra.mxu0 %v907_v41  ;;  %1934 = vmatpush1.msra.mxu1 %v909_v46  ;;  %v1010_v41 = vrot.slane %v952_v22, %v3089_v5 }
 0x1c4   :  { %1896 = vmatprep.mubr.f32.mxu0 %v2538_v0  ;;  %1967 = vmatprep.mubr.f32.mxu1 %v2538_v0 }
 0x1c5   :  { %2002 = vmatprep.subr.mxu0 %v944_v42  ;;  %2073 = vmatprep.subr.mxu1 %v946_v43  ;;  %v1014_v42 = vrot.slane %v952_v22, %v3095_v11  ;;  %v1022_v43 = vrot.slane %v952_v22, %v3098_v12 }
 0x1c6   :  { %2352 = vmatmul.mubr.msk.f32.vlgmr.msra.gmra.mxu0 %vm25_vm3, %v2865_v6  ;;  %2353 = vmatmul.mubr.msk.f32.vlgmr.msra.gmra.mxu1 %vm25_vm3, %v2865_v6 }
 0x1c7   :  { %2003 = vmatpush1.msra.mxu0 %v943_v47  ;;  %2074 = vmatpush1.msra.mxu1 %v945_v48 }
 0x1c8   :  { %2004 = vmatprep.subr.mxu0 %v912_v49  ;;  %2075 = vmatprep.subr.mxu1 %v914_v50  ;;  %v953_v49 = vld [vmem:[%s3237_s4 + $0x10] sm:$0xff] }
 0x1c9   :  { %2005 = vmatpush1.msra.mxu0 %v911_v51  ;;  %2076 = vmatpush1.msra.mxu1 %v913_v53 }
 0x1ca   :  { %2038 = vmatprep.mubr.f32.mxu0 %v2538_v0  ;;  %2109 = vmatprep.mubr.f32.mxu1 %v2538_v0 }
 0x1cb   :  { %2144 = vmatprep.subr.mxu0 %v948_v54  ;;  %2215 = vmatprep.subr.mxu1 %v950_v55 }
 0x1cc   :  { %2354 = vmatmul.mubr.msk.f32.vlgmr.msra.gmra.mxu0 %vm25_vm3, %v2865_v6  ;;  %2355 = vmatmul.mubr.msk.f32.vlgmr.msra.gmra.mxu1 %vm25_vm3, %v2865_v6 }
 0x1cd   :  { %2145 = vmatpush1.msra.mxu0 %v947_v56  ;;  %2216 = vmatpush1.msra.mxu1 %v949_v57  ;;  %v1026_v57 = vrot.slane %v953_v49, %v3070_v62 }
 0x1ce   :  { %2146 = vmatprep.subr.mxu0 %v916_v58  ;;  %2217 = vmatprep.subr.mxu1 %v918_v59  ;;  %v1034_v58 = vrot.slane %v953_v49, %v3073_v63  ;;  %v1030_v59 = vrot.slane %v953_v49, %v3079_v2 }
 0x1cf   :  { %2147 = vmatpush1.msra.mxu0 %v915_v60  ;;  %2218 = vmatpush1.msra.mxu1 %v917_v61 }
 0x1d0   :  { %2180 = vmatprep.mubr.f32.mxu0 %v2538_v0  ;;  %2251 = vmatprep.mubr.f32.mxu1 %v2538_v0  ;;  %v3082_v0 = vsub.s32 3, %v2845_v24 }
 0x1d1   :  { %2356 = vmatmul.mubr.msk.f32.vlgmr.msra.gmra.mxu0 %vm25_vm3, %v2865_v6  ;;  %2357 = vmatmul.mubr.msk.f32.vlgmr.msra.gmra.mxu1 %vm25_vm3, %v2865_v6  ;;  %v3092_v6 = vsub.s32 6, %v2845_v24  ;;  %v982_v24 = vrot.slane %v951_v1, %v3095_v11 }
 0x1d2   :  { %v974_v52 = vrot.slane %v951_v1, %v3082_v0  ;;  %v1006_v33 = vrot.slane %v952_v22, %v3082_v0  ;;  %v1038_v60 = vrot.slane %v953_v49, %v3082_v0 }
 0x1d3   :  { %v986_v18 = vrot.slane %v951_v1, %v3092_v6  ;;  %v1018_v46 = vrot.slane %v952_v22, %v3092_v6 }
 0x268   :  { %v1188_v7 = vpop.f32.mrf.mxu0  ;;  %v1259_v8 = vpop.f32.mrf.mxu1 }
 0x269   :  { %v1189_v9 = vadd.f32 %v1188_v7, %v962_v45  ;;  %v1260_v10 = vadd.f32 %v1259_v8, %v970_v3 }
 0x26a   :  { %v1190_v13 = vpop.f32.mrf.mxu0  ;;  %v1261_v14 = vpop.f32.mrf.mxu1 }
 0x26b   :  { %2258 = vst [vmem:[%s3238_s5] sm:$0xff] %v1189_v9  ;;  %2260 = vst [vmem:[%s3238_s5 + $0x10] sm:$0xff] %v1260_v10  ;;  %v1191_v15 = vadd.f32 %v1190_v13, %v966_v4  ;;  %v1262_v16 = vadd.f32 %v1261_v14, %v974_v52  ;;  %v1042_v9 = vrot.slane %v953_v49, %v3089_v5 }
 0x26c   :  { %v1050_v10 = vrot.slane %v953_v49, %v3092_v6  ;;  %v1046_v13 = vrot.slane %v953_v49, %v3095_v11  ;;  %v1054_v14 = vrot.slane %v953_v49, %v3098_v12 }
 0x26d   :  { %2259 = vst [vmem:[%s3238_s5 + $0x8] sm:$0xff] %v1191_v15  ;;  %2261 = vst [vmem:[%s3238_s5 + $0x18] sm:$0xff] %v1262_v16 }
 0x26e   :  { %v1330_v20 = vpop.f32.mrf.mxu0  ;;  %v1401_v21 = vpop.f32.mrf.mxu1 }
 0x26f   :  { %v1331_v23 = vadd.f32 %v1330_v20, %v978_v17  ;;  %v1402_v25 = vadd.f32 %v1401_v21, %v986_v18  ;;  %v954_v17 = vld [vmem:[%s3237_s4 + $0x18] sm:$0xff] }
 0x270   :  { %v1332_v26 = vpop.f32.mrf.mxu0  ;;  %v1403_v27 = vpop.f32.mrf.mxu1 }
 0x271   :  { %2262 = vst [vmem:[%s3238_s5 + $0x20] sm:$0xff] %v1331_v23  ;;  %2264 = vst [vmem:[%s3238_s5 + $0x30] sm:$0xff] %v1402_v25  ;;  %v1333_v28 = vadd.f32 %v1332_v26, %v982_v24  ;;  %v1404_v29 = vadd.f32 %v1403_v27, %v990_v19  ;;  %v1058_v23 = vrot.slane %v954_v17, %v3070_v62 }
 0x272   :  { %v1066_v25 = vrot.slane %v954_v17, %v3073_v63  ;;  %v1062_v26 = vrot.slane %v954_v17, %v3079_v2  ;;  %v1070_v27 = vrot.slane %v954_v17, %v3082_v0  ;;  %v1074_v63 = vrot.slane %v954_v17, %v3089_v5 }
 0x273   :  { %2263 = vst [vmem:[%s3238_s5 + $0x28] sm:$0xff] %v1333_v28  ;;  %2265 = vst [vmem:[%s3238_s5 + $0x38] sm:$0xff] %v1404_v29 }
 0x274   :  { %v1472_v34 = vpop.f32.mrf.mxu0  ;;  %v1543_v35 = vpop.f32.mrf.mxu1 }
 0x275   :  { %v1473_v36 = vadd.f32 %v1472_v34, %v994_v30  ;;  %v1544_v37 = vadd.f32 %v1543_v35, %v1002_v31  ;;  %v1078_v34 = vrot.slane %v954_v17, %v3095_v11  ;;  %v1086_v35 = vrot.slane %v954_v17, %v3098_v12 }
 0x276   :  { %v1474_v38 = vpop.f32.mrf.mxu0  ;;  %v1545_v44 = vpop.f32.mrf.mxu1 }
 0x277   :  { %2266 = vst [vmem:[%s3238_s5 + $0x40] sm:$0xff] %v1473_v36  ;;  %2268 = vst [vmem:[%s3238_s5 + $0x50] sm:$0xff] %v1544_v37  ;;  %v1475_v39 = vadd.f32 %v1474_v38, %v998_v32  ;;  %v1546_v40 = vadd.f32 %v1545_v44, %v1006_v33  ;;  %v1082_v33 = vrot.slane %v954_v17, %v3092_v6 }
 0x279   :  { %2267 = vst [vmem:[%s3238_s5 + $0x48] sm:$0xff] %v1475_v39  ;;  %2269 = vst [vmem:[%s3238_s5 + $0x58] sm:$0xff] %v1546_v40 }
 0x27a   :  { %v1614_v47 = vpop.f32.mrf.mxu0  ;;  %v1685_v48 = vpop.f32.mrf.mxu1 }
 0x27b   :  { %v1615_v50 = vadd.f32 %v1614_v47, %v1010_v41  ;;  %v1686_v51 = vadd.f32 %v1685_v48, %v1018_v46 }
 0x27c   :  { %v1616_v53 = vpop.f32.mrf.mxu0  ;;  %v1687_v54 = vpop.f32.mrf.mxu1 }
 0x27d   :  { %2270 = vst [vmem:[%s3238_s5 + $0x60] sm:$0xff] %v1615_v50  ;;  %2272 = vst [vmem:[%s3238_s5 + $0x70] sm:$0xff] %v1686_v51  ;;  %v1617_v55 = vadd.f32 %v1616_v53, %v1014_v42  ;;  %v1688_v56 = vadd.f32 %v1687_v54, %v1022_v43 }
 0x27f   :  { %2271 = vst [vmem:[%s3238_s5 + $0x68] sm:$0xff] %v1617_v55  ;;  %2273 = vst [vmem:[%s3238_s5 + $0x78] sm:$0xff] %v1688_v56 }
 0x280   :  { %v1756_v61 = vpop.f32.mrf.mxu0  ;;  %v1827_v1 = vpop.f32.mrf.mxu1 }
 0x281   :  { %v1757_v45 = vadd.f32 %v1756_v61, %v1026_v57  ;;  %v1828_v3 = vadd.f32 %v1827_v1, %v1034_v58 }
 0x282   :  { %v1758_v4 = vpop.f32.mrf.mxu0  ;;  %v1829_v52 = vpop.f32.mrf.mxu1 }
 0x283   :  { %2274 = vst [vmem:[%s3238_s5 + $0x80] sm:$0xff] %v1757_v45  ;;  %2276 = vst [vmem:[%s3238_s5 + $0x90] sm:$0xff] %v1828_v3  ;;  %v1759_v7 = vadd.f32 %v1758_v4, %v1030_v59  ;;  %v1830_v8 = vadd.f32 %v1829_v52, %v1038_v60 }
 0x285   :  { %2275 = vst [vmem:[%s3238_s5 + $0x88] sm:$0xff] %v1759_v7  ;;  %2277 = vst [vmem:[%s3238_s5 + $0x98] sm:$0xff] %v1830_v8 }
 0x286   :  { %v1898_v15 = vpop.f32.mrf.mxu0  ;;  %v1969_v16 = vpop.f32.mrf.mxu1 }
 0x287   :  { %v1899_v18 = vadd.f32 %v1898_v15, %v1042_v9  ;;  %v1970_v24 = vadd.f32 %v1969_v16, %v1050_v10 }
 0x288   :  { %v1900_v19 = vpop.f32.mrf.mxu0  ;;  %v1971_v20 = vpop.f32.mrf.mxu1 }
 0x289   :  { %2278 = vst [vmem:[%s3238_s5 + $0xa0] sm:$0xff] %v1899_v18  ;;  %2280 = vst [vmem:[%s3238_s5 + $0xb0] sm:$0xff] %v1970_v24  ;;  %v1901_v21 = vadd.f32 %v1900_v19, %v1046_v13  ;;  %v1972_v22 = vadd.f32 %v1971_v20, %v1054_v14 }
 0x28b   :  { %2279 = vst [vmem:[%s3238_s5 + $0xa8] sm:$0xff] %v1901_v21  ;;  %2281 = vst [vmem:[%s3238_s5 + $0xb8] sm:$0xff] %v1972_v22 }
 0x28c   :  { %v2040_v28 = vpop.f32.mrf.mxu0  ;;  %v2111_v29 = vpop.f32.mrf.mxu1 }
 0x28d   :  { %v2041_v30 = vadd.f32 %v2040_v28, %v1058_v23  ;;  %v2112_v31 = vadd.f32 %v2111_v29, %v1066_v25 }
 0x28e   :  { %v2042_v32 = vpop.f32.mrf.mxu0  ;;  %v2113_v62 = vpop.f32.mrf.mxu1 }
 0x28f   :  { %2282 = vst [vmem:[%s3238_s5 + $0xc0] sm:$0xff] %v2041_v30  ;;  %2284 = vst [vmem:[%s3238_s5 + $0xd0] sm:$0xff] %v2112_v31  ;;  %v2043_v2 = vadd.f32 %v2042_v32, %v1062_v26  ;;  %v2114_v0 = vadd.f32 %v2113_v62, %v1070_v27 }
 0x291   :  { %2283 = vst [vmem:[%s3238_s5 + $0xc8] sm:$0xff] %v2043_v2  ;;  %2285 = vst [vmem:[%s3238_s5 + $0xd8] sm:$0xff] %v2114_v0  ;;  %v2182_v5 = vpop.f32.mrf.mxu0  ;;  %v2253_v6 = vpop.f32.mrf.mxu1 }
 0x292   :  { %v2183_v36 = vadd.f32 %v2182_v5, %v1074_v63  ;;  %v2254_v37 = vadd.f32 %v2253_v6, %v1082_v33 }
 0x293   :  { %v2184_v38 = vpop.f32.mrf.mxu0  ;;  %v2255_v44 = vpop.f32.mrf.mxu1 }
 0x294   :  { %2286 = vst [vmem:[%s3238_s5 + $0xe0] sm:$0xff] %v2183_v36  ;;  %2288 = vst [vmem:[%s3238_s5 + $0xf0] sm:$0xff] %v2254_v37  ;;  %v2185_v11 = vadd.f32 %v2184_v38, %v1078_v34  ;;  %v2256_v12 = vadd.f32 %v2255_v44, %v1086_v35 }
 0x296   :  { %2287 = vst [vmem:[%s3238_s5 + $0xe8] sm:$0xff] %v2185_v11  ;;  %2289 = vst [vmem:[%s3238_s5 + $0xf8] sm:$0xff] %v2256_v12 }

</bundles_post_ra>
